<compile_context>
chip_gen: v7x
topology: tpu7x:2x2x1
jax: 0.10.0
libtpu: 0.0.40
codegen_flags: <defaults>
</compile_context>

<pallas_src>
import jax
import jax.numpy as jnp
from jax import lax
from jax.experimental import pallas as pl
from jax.experimental.pallas import tpu as pltpu


def _ceil_to(x, m):
    return -(-x // m) * m


def _vmem_capacity_bytes():
    try:
        return int(pltpu.get_tpu_info().vmem_capacity_bytes)
    except Exception:
        return 64 << 20  # conservative (v7x per-TC VMEM)


def _pick_tile_n(n, max_tile):
    """Whole N when it fits; otherwise the largest multiple-of-128 divisor <= max_tile."""
    if n <= max_tile:
        return n
    for t in range(max_tile - max_tile % 128, 127, -128):
        if n % t == 0:
            return t
    return n  # fallback: single full-N block (always legal as a full-dim block)


def _pick_tile_b(B, D, tile_n, channels):
    """Batch elements per grid step: amortize per-step overhead, stay inside a small budget."""
    lane = _ceil_to(tile_n, 128)
    c_max = max(channels)
    per_b = (_ceil_to(3, 8) + _ceil_to(D, 8)) * lane * 4          # f32 inputs
    per_b += 2 * _ceil_to(c_max, 8) * lane * 4                    # live f32 activations
    budget = 4 << 20
    bt = int(max(1, min(B, 8, budget // max(per_b, 1))))
    while B % bt:
        bt -= 1
    return bt


def _make_kernel(num_layers, compute_dtype, tile_b, tile_n):
    lane_chunks = tile_n // 128 if tile_n % 128 == 0 else 0

    def kernel(xyz_ref, pts_ref, *refs):
        acc_ref = refs[-1]          # (tile_b, c_out, acc_w) f32 running max scratch
        out_ref = refs[-2]          # (tile_b, c_out, 1) output block
        params = refs[:-2]          # [w0_xyz, w0_pts, t0, w1, t1, ...]

        n_step = pl.program_id(1)

        @pl.when(n_step == 0)
        def _():
            # ReLU outputs are >= 0, so 0 is a valid identity for the running max.
            # (If the final ReLU were ever removed, this must become -inf.)
            acc_ref[...] = jnp.zeros_like(acc_ref)

        # Hoist all parameter loads out of the batch loop.
        w0_xyz = params[0][...]     # (c0, 3)   BN scale already folded in
        w0_pts = params[1][...]     # (c0, D)
        t0 = params[2][...]         # (c0, 1)   folded BN shift (incl. conv bias), f32
        w_rest, t_rest = [], []
        p = 3
        for _ in range(1, num_layers):
            w_rest.append(params[p][...])
            t_rest.append(params[p + 1][...])
            p += 2

        def body(b, carry):
            # Cast after the DMA: inputs arrive as f32, MXU operands may be bf16.
            xyz = xyz_ref[b].astype(compute_dtype)   # (3, tile_n)
            pts = pts_ref[b].astype(compute_dtype)   # (D, tile_n)

            # Layer 0: split weight so no concat of xyz/points is needed.
            h = (jnp.dot(w0_xyz, xyz, preferred_element_type=jnp.float32)
                 + jnp.dot(w0_pts, pts, preferred_element_type=jnp.float32))
            h = jnp.maximum(h + t0, 0.0)              # (c0, tile_n), f32

            for w, t in zip(w_rest, t_rest):
                h = jnp.dot(w, h.astype(compute_dtype),
                            preferred_element_type=jnp.float32)
                h = jnp.maximum(h + t, 0.0)

            if lane_chunks >= 1:
                # Lane-dense partial max: elementwise VPU maxes over 128-lane chunks.
                tile_max = h[:, 0:128]
                for c in range(1, lane_chunks):
                    tile_max = jnp.maximum(tile_max, h[:, c * 128:(c + 1) * 128])
            else:
                # tile_n not a multiple of 128 (single-step, small N): cross-lane
                # reduce over the logical lane extent masks the garbage padding.
                tile_max = jnp.max(h, axis=-1, keepdims=True)

            acc_ref[b] = jnp.maximum(acc_ref[b], tile_max)
            return carry

        lax.fori_loop(0, tile_b, body, None, unroll=True)

        @pl.when(n_step == pl.num_programs(1) - 1)
        def _():
            out_ref[...] = jnp.max(acc_ref[...], axis=-1,
                                   keepdims=True).astype(out_ref.dtype)

    return kernel


def pointnet_set_abstraction_group_all(xyz, points, weights, scales, shifts,
                                       *, tile_n=None, tile_b=None,
                                       compute_dtype=jnp.float32):
    """xyz: (B, 3, N), points: (B, D, N).

    Returns (new_xyz (B, 3, 1), new_points (B, mlp[-1], 1)) matching the PyTorch
    module with group_all=True and eval-mode BatchNorm.
    """
    B, three, N = xyz.shape
    assert three == 3
    D = points.shape[1]
    num_layers = len(weights)
    channels = [w.shape[-1] for w in weights]
    c_out = channels[-1]

    cap = _vmem_capacity_bytes()
    max_tile = 2048 if cap > (64 << 20) else 1024   # smaller lane tiles on v7x

    if tile_n is None:
        tile_n = _pick_tile_n(N, max_tile)
    assert N % tile_n == 0
    assert tile_n == N or tile_n % 128 == 0, \
        "tile_n must equal N or be a multiple of 128"
    n_steps = N // tile_n

    if tile_b is None:
        tile_b = _pick_tile_b(B, D, tile_n, channels)
    assert B % tile_b == 0

    # Fold BN scale into the conv weight, pre-transpose to (C_out, C_in), split the
    # first layer into the xyz / points halves.
    folded_w, folded_t = [], []
    for w, s, t in zip(weights, scales, shifts):
        folded_w.append(jnp.transpose(w * s).astype(compute_dtype))   # (C_out, C_in)
        folded_t.append(jnp.reshape(t, (-1, 1)).astype(jnp.float32))  # (C_out, 1)
    w0_xyz = folded_w[0][:, :3]
    w0_pts = folded_w[0][:, 3:]

    param_args = [w0_xyz, w0_pts, folded_t[0]]
    for i in range(1, num_layers):
        param_args += [folded_w[i], folded_t[i]]

    # Inputs: f32 in HBM (cast to compute_dtype happens inside the kernel, post-DMA).
    xyz = xyz.astype(jnp.float32)
    points = points.astype(jnp.float32)

    # BlockSpecs.  Deeper input pipelining only when there are enough N steps.
    if n_steps >= 3:
        xyz_spec = pl.BlockSpec((tile_b, 3, tile_n), lambda b, n: (b, 0, n),
                                pipeline_mode=pl.Buffered(3))
        pts_spec = pl.BlockSpec((tile_b, D, tile_n), lambda b, n: (b, 0, n),
                                pipeline_mode=pl.Buffered(3))
        in_buf = 3
    else:
        xyz_spec = pl.BlockSpec((tile_b, 3, tile_n), lambda b, n: (b, 0, n))
        pts_spec = pl.BlockSpec((tile_b, D, tile_n), lambda b, n: (b, 0, n))
        in_buf = 2
    in_specs = [xyz_spec, pts_spec]
    for a in param_args:            # constant index_map -> single-buffered params
        in_specs.append(pl.BlockSpec(a.shape, lambda b, n: (0, 0),
                                     pipeline_mode=pl.Buffered(1)))

    acc_w = 128 if tile_n % 128 == 0 else 1

    # Rough VMEM budget (sublanes padded to 8, lanes to 128), with headroom,
    # clamped to ~85% of this generation's physical VMEM.
    lane_n = _ceil_to(tile_n, 128)
    est = in_buf * tile_b * (_ceil_to(3, 8) + _ceil_to(D, 8)) * lane_n * 4
    for a in param_args:
        est += _ceil_to(a.shape[0], 8) * _ceil_to(a.shape[1], 128) * a.dtype.itemsize
    est += 2 * tile_b * sum(_ceil_to(c, 8) * lane_n * 4 for c in channels)   # live activations
    est += 2 * tile_b * _ceil_to(c_out, 8) * 128 * 4                          # out block + acc scratch
    vmem_limit = int(min(max(32 << 20, int(1.5 * est)), int(0.85 * cap)))

    out = pl.pallas_call(
        _make_kernel(num_layers, compute_dtype, tile_b, tile_n),
        out_shape=jax.ShapeDtypeStruct((B, c_out, 1), jnp.float32),
        grid=(B // tile_b, n_steps),
        in_specs=in_specs,
        out_specs=pl.BlockSpec((tile_b, c_out, 1), lambda b, n: (b, 0, 0)),
        scratch_shapes=[pltpu.VMEM((tile_b, c_out, acc_w), jnp.float32)],
        compiler_params=pltpu.CompilerParams(
            dimension_semantics=("parallel", "arbitrary"),
            vmem_limit_bytes=vmem_limit),
    )(xyz, points, *param_args)

    new_xyz = jnp.zeros((B, 3, 1), jnp.float32)
    return new_xyz, out                        # out is already (B, mlp[-1], 1)


def init_params(in_channel, mlp, key):
    """Deterministic synthetic parameters. BN (eval mode) is folded into (scale, shift)."""
    weights, scales, shifts = [], [], []
    last = in_channel
    eps = 1e-5
    for out_c in mlp:
        key, k1, k2, k3, k4, k5, k6 = jax.random.split(key, 7)
        w = jax.random.normal(k1, (last, out_c), jnp.float32) * 0.2        # conv weight (C_in, C_out)
        b = jax.random.normal(k2, (out_c,), jnp.float32) * 0.1             # conv bias
        gamma = 1.0 + 0.1 * jax.random.normal(k3, (out_c,), jnp.float32)   # BN weight
        beta = 0.1 * jax.random.normal(k4, (out_c,), jnp.float32)          # BN bias
        mean = 0.1 * jax.random.normal(k5, (out_c,), jnp.float32)          # BN running_mean
        var = jnp.abs(jax.random.normal(k6, (out_c,), jnp.float32)) + 0.5  # BN running_var
        s = gamma / jnp.sqrt(var + eps)
        t = (b - mean) * s + beta
        weights.append(w)
        scales.append(s.reshape(1, out_c))
        shifts.append(t.reshape(1, out_c))
        last = out_c
    return weights, scales, shifts


def reference(xyz, points, weights, scales, shifts):
    """Pure-JAX reference of the PyTorch forward (group_all=True, eval BN)."""
    x = jnp.concatenate([xyz, points], axis=1)             # (B, C, N)
    h = jnp.transpose(x, (0, 2, 1)).astype(jnp.float32)    # (B, N, C)
    for w, s, t in zip(weights, scales, shifts):
        h = jnp.maximum(jnp.einsum("bnc,cd->bnd", h, w) * s + t, 0.0)
    new_points = jnp.max(h, axis=1)                        # (B, C_out)
    new_xyz = jnp.zeros((xyz.shape[0], 3, 1), jnp.float32)
    return new_xyz, new_points[..., None]                  # (B, C_out, 1)


if __name__ == "__main__":
    def check(B, D, N, mlp, *, tile_n=None, compute_dtype=jnp.float32,
              atol=1e-5, rtol=1e-5, seed=0):
        key = jax.random.PRNGKey(seed)
        key, kx, kp = jax.random.split(key, 3)
        xyz = jax.random.normal(kx, (B, 3, N), jnp.float32)
        points = jax.random.normal(kp, (B, D, N), jnp.float32)
        weights, scales, shifts = init_params(3 + D, mlp, key)
        ref_xyz, ref_pts = reference(xyz, points, weights, scales, shifts)
        new_xyz, new_pts = jax.block_until_ready(
            pointnet_set_abstraction_group_all(
                xyz, points, weights, scales, shifts,
                tile_n=tile_n, compute_dtype=compute_dtype))
        assert new_xyz.shape == (B, 3, 1)
        assert new_pts.shape == (B, mlp[-1], 1)
        assert jnp.allclose(new_xyz, ref_xyz)
        assert jnp.allclose(new_pts, ref_pts, atol=atol, rtol=rtol), \
            f"mismatch for B={B} D={D} N={N} mlp={mlp} dtype={compute_dtype}"

    # Module config: PointNetSetAbstraction(npoint=None, radius=None, nsample=None,
    #                                       in_channel=3+D, mlp=[16, 32], group_all=True)
    # Small-N single-step path with batch blocking (B folded into one grid step).
    check(2, 4, 16, [16, 32])
    # Lane-dense accumulator + multi-step N reduction (tile_n=128 -> 2 N steps).
    check(2, 4, 256, [16, 32], tile_n=128)
    # Deep input pipeline path (>= 3 N steps -> pl.Buffered(3) on xyz/points).
    check(2, 4, 512, [16, 32], tile_n=128)
    # bf16 MXU operands (allowed on all generations incl. v5e); f32 accumulate,
    # inputs DMA'd as f32 and cast inside the kernel.
    check(2, 4, 256, [16, 32], tile_n=128, compute_dtype=jnp.bfloat16,
          atol=5e-2, rtol=5e-2)

    print("KERNEL_OK")
</pallas_src>

<mosaic_0001>
module attributes {stable_mosaic.version = 11 : i64} {
  func.func @kernel(%arg0: i32, %arg1: i32, %arg2: memref<2x3x16xf32, #tpu.memory_space<vmem>>, %arg3: memref<2x4x16xf32, #tpu.memory_space<vmem>>, %arg4: memref<16x3xf32, #tpu.memory_space<vmem>>, %arg5: memref<16x4xf32, #tpu.memory_space<vmem>>, %arg6: memref<16x1xf32, #tpu.memory_space<vmem>>, %arg7: memref<32x16xf32, #tpu.memory_space<vmem>>, %arg8: memref<32x1xf32, #tpu.memory_space<vmem>>, %arg9: memref<2x32x1xf32, #tpu.memory_space<vmem>>, %arg10: memref<2x32x1xf32, #tpu.memory_space<vmem>>) attributes {dimension_semantics = [#tpu.dimension_semantics<parallel>, #tpu.dimension_semantics<arbitrary>], iteration_bounds = array<i64: 1, 1>, scalar_prefetch = 0 : i64, scratch_operands = 1 : i64, tpu.core_type = #tpu.core_type<tc>, window_params = [{transform_indices = @transform_0, window_bounds = array<i64: 2, 3, 16>}, {transform_indices = @transform_1, window_bounds = array<i64: 2, 4, 16>}, {pipeline_mode = #tpu.pipeline_mode<synchronous>, transform_indices = @transform_2, window_bounds = array<i64: 16, 3>}, {pipeline_mode = #tpu.pipeline_mode<synchronous>, transform_indices = @transform_3, window_bounds = array<i64: 16, 4>}, {pipeline_mode = #tpu.pipeline_mode<synchronous>, transform_indices = @transform_4, window_bounds = array<i64: 16, 1>}, {pipeline_mode = #tpu.pipeline_mode<synchronous>, transform_indices = @transform_5, window_bounds = array<i64: 32, 16>}, {pipeline_mode = #tpu.pipeline_mode<synchronous>, transform_indices = @transform_6, window_bounds = array<i64: 32, 1>}, {transform_indices = @transform_7, window_bounds = array<i64: 2, 32, 1>}]} {
    %c0_i32 = arith.constant 0 : i32
    %0 = arith.cmpi eq, %arg1, %c0_i32 : i32
    %1 = arith.extui %0 : i1 to i32
    %c0_i32_0 = arith.constant 0 : i32
    %2 = arith.cmpi ne, %1, %c0_i32_0 : i32
    scf.if %2 {
      %cst_40 = arith.constant 0.000000e+00 : f32
      %67 = vector.broadcast %cst_40 : f32 to vector<2x32x1xf32>
      %c0_41 = arith.constant 0 : index
      %c0_42 = arith.constant 0 : index
      %c0_43 = arith.constant 0 : index
      %68 = vector.load %arg10[%c0_41, %c0_42, %c0_43] : memref<2x32x1xf32, #tpu.memory_space<vmem>>, vector<2x32x1xf32>
      tpu.vector_store %arg10[%c0_41, %c0_42, %c0_43], %67 {strides = array<i32>} : memref<2x32x1xf32, #tpu.memory_space<vmem>>, vector<2x32x1xf32>,
    } else {
    }
    %c0 = arith.constant 0 : index
    %c0_1 = arith.constant 0 : index
    %3 = vector.load %arg4[%c0, %c0_1] : memref<16x3xf32, #tpu.memory_space<vmem>>, vector<16x3xf32>
    %c0_2 = arith.constant 0 : index
    %c0_3 = arith.constant 0 : index
    %4 = vector.load %arg5[%c0_2, %c0_3] : memref<16x4xf32, #tpu.memory_space<vmem>>, vector<16x4xf32>
    %c0_4 = arith.constant 0 : index
    %c0_5 = arith.constant 0 : index
    %5 = vector.load %arg6[%c0_4, %c0_5] : memref<16x1xf32, #tpu.memory_space<vmem>>, vector<16x1xf32>
    %c0_6 = arith.constant 0 : index
    %c0_7 = arith.constant 0 : index
    %6 = vector.load %arg7[%c0_6, %c0_7] : memref<32x16xf32, #tpu.memory_space<vmem>>, vector<32x16xf32>
    %c0_8 = arith.constant 0 : index
    %c0_9 = arith.constant 0 : index
    %7 = vector.load %arg8[%c0_8, %c0_9] : memref<32x1xf32, #tpu.memory_space<vmem>>, vector<32x1xf32>
    %c0_i32_10 = arith.constant 0 : i32
    %8 = arith.index_cast %c0_i32_10 : i32 to index
    %c0_11 = arith.constant 0 : index
    %c0_12 = arith.constant 0 : index
    %9 = vector.load %arg2[%8, %c0_11, %c0_12] : memref<2x3x16xf32, #tpu.memory_space<vmem>>, vector<1x3x16xf32>
    %10 = vector.shape_cast %9 : vector<1x3x16xf32> to vector<3x16xf32>
    %11 = arith.index_cast %c0_i32_10 : i32 to index
    %c0_13 = arith.constant 0 : index
    %c0_14 = arith.constant 0 : index
    %12 = vector.load %arg3[%11, %c0_13, %c0_14] : memref<2x4x16xf32, #tpu.memory_space<vmem>>, vector<1x4x16xf32>
    %13 = vector.shape_cast %12 : vector<1x4x16xf32> to vector<4x16xf32>
    %cst = arith.constant dense<0.000000e+00> : vector<16x16xf32>
    %14 = tpu.matmul %3, %10, %cst {dimension_numbers = #tpu.dot_dimension_numbers<[1], [0], [0], [1], [0, 0, 1, 1], [], []>} : vector<16x3xf32>, vector<3x16xf32>, vector<16x16xf32> -> vector<16x16xf32>
    %cst_15 = arith.constant dense<0.000000e+00> : vector<16x16xf32>
    %15 = tpu.matmul %4, %13, %cst_15 {dimension_numbers = #tpu.dot_dimension_numbers<[1], [0], [0], [1], [0, 0, 1, 1], [], []>} : vector<16x4xf32>, vector<4x16xf32>, vector<16x16xf32> -> vector<16x16xf32>
    %16 = arith.addf %14, %15 : vector<16x16xf32>
    %17 = vector.broadcast %5 : vector<16x1xf32> to vector<16x16xf32>
    %18 = arith.addf %16, %17 : vector<16x16xf32>
    %cst_16 = arith.constant 0.000000e+00 : f32
    %19 = vector.broadcast %cst_16 : f32 to vector<16x16xf32>
    %20 = arith.maximumf %18, %19 : vector<16x16xf32>
    %cst_17 = arith.constant dense<0.000000e+00> : vector<32x16xf32>
    %21 = tpu.matmul %6, %20, %cst_17 {dimension_numbers = #tpu.dot_dimension_numbers<[1], [0], [0], [1], [0, 0, 1, 1], [], []>} : vector<32x16xf32>, vector<16x16xf32>, vector<32x16xf32> -> vector<32x16xf32>
    %22 = vector.broadcast %7 : vector<32x1xf32> to vector<32x16xf32>
    %23 = arith.addf %21, %22 : vector<32x16xf32>
    %cst_18 = arith.constant 0.000000e+00 : f32
    %24 = vector.broadcast %cst_18 : f32 to vector<32x16xf32>
    %25 = arith.maximumf %23, %24 : vector<32x16xf32>
    %cst_19 = arith.constant dense<0xFF800000> : vector<32xf32>
    %26 = vector.multi_reduction <maximumf>, %25, %cst_19 [1] : vector<32x16xf32> to vector<32xf32>
    %27 = vector.shape_cast %26 : vector<32xf32> to vector<32x1xf32>
    %28 = arith.index_cast %c0_i32_10 : i32 to index
    %c0_20 = arith.constant 0 : index
    %c0_21 = arith.constant 0 : index
    %29 = vector.load %arg10[%28, %c0_20, %c0_21] : memref<2x32x1xf32, #tpu.memory_space<vmem>>, vector<1x32x1xf32>
    %30 = vector.shape_cast %29 : vector<1x32x1xf32> to vector<32x1xf32>
    %31 = arith.maximumf %30, %27 : vector<32x1xf32>
    %32 = arith.index_cast %c0_i32_10 : i32 to index
    %c0_22 = arith.constant 0 : index
    %c0_23 = arith.constant 0 : index
    %33 = vector.load %arg10[%32, %c0_22, %c0_23] : memref<2x32x1xf32, #tpu.memory_space<vmem>>, vector<1x32x1xf32>
    %34 = vector.shape_cast %33 : vector<1x32x1xf32> to vector<32x1xf32>
    %35 = vector.shape_cast %31 : vector<32x1xf32> to vector<1x32x1xf32>
    tpu.vector_store %arg10[%32, %c0_22, %c0_23], %35 {strides = array<i32>} : memref<2x32x1xf32, #tpu.memory_space<vmem>>, vector<1x32x1xf32>,
    %c1_i32 = arith.constant 1 : i32
    %36 = arith.index_cast %c1_i32 : i32 to index
    %c0_24 = arith.constant 0 : index
    %c0_25 = arith.constant 0 : index
    %37 = vector.load %arg2[%36, %c0_24, %c0_25] : memref<2x3x16xf32, #tpu.memory_space<vmem>>, vector<1x3x16xf32>
    %38 = vector.shape_cast %37 : vector<1x3x16xf32> to vector<3x16xf32>
    %39 = arith.index_cast %c1_i32 : i32 to index
    %c0_26 = arith.constant 0 : index
    %c0_27 = arith.constant 0 : index
    %40 = vector.load %arg3[%39, %c0_26, %c0_27] : memref<2x4x16xf32, #tpu.memory_space<vmem>>, vector<1x4x16xf32>
    %41 = vector.shape_cast %40 : vector<1x4x16xf32> to vector<4x16xf32>
    %cst_28 = arith.constant dense<0.000000e+00> : vector<16x16xf32>
    %42 = tpu.matmul %3, %38, %cst_28 {dimension_numbers = #tpu.dot_dimension_numbers<[1], [0], [0], [1], [0, 0, 1, 1], [], []>} : vector<16x3xf32>, vector<3x16xf32>, vector<16x16xf32> -> vector<16x16xf32>
    %cst_29 = arith.constant dense<0.000000e+00> : vector<16x16xf32>
    %43 = tpu.matmul %4, %41, %cst_29 {dimension_numbers = #tpu.dot_dimension_numbers<[1], [0], [0], [1], [0, 0, 1, 1], [], []>} : vector<16x4xf32>, vector<4x16xf32>, vector<16x16xf32> -> vector<16x16xf32>
    %44 = arith.addf %42, %43 : vector<16x16xf32>
    %45 = vector.broadcast %5 : vector<16x1xf32> to vector<16x16xf32>
    %46 = arith.addf %44, %45 : vector<16x16xf32>
    %cst_30 = arith.constant 0.000000e+00 : f32
    %47 = vector.broadcast %cst_30 : f32 to vector<16x16xf32>
    %48 = arith.maximumf %46, %47 : vector<16x16xf32>
    %cst_31 = arith.constant dense<0.000000e+00> : vector<32x16xf32>
    %49 = tpu.matmul %6, %48, %cst_31 {dimension_numbers = #tpu.dot_dimension_numbers<[1], [0], [0], [1], [0, 0, 1, 1], [], []>} : vector<32x16xf32>, vector<16x16xf32>, vector<32x16xf32> -> vector<32x16xf32>
    %50 = vector.broadcast %7 : vector<32x1xf32> to vector<32x16xf32>
    %51 = arith.addf %49, %50 : vector<32x16xf32>
    %cst_32 = arith.constant 0.000000e+00 : f32
    %52 = vector.broadcast %cst_32 : f32 to vector<32x16xf32>
    %53 = arith.maximumf %51, %52 : vector<32x16xf32>
    %cst_33 = arith.constant dense<0xFF800000> : vector<32xf32>
    %54 = vector.multi_reduction <maximumf>, %53, %cst_33 [1] : vector<32x16xf32> to vector<32xf32>
    %55 = vector.shape_cast %54 : vector<32xf32> to vector<32x1xf32>
    %56 = arith.index_cast %c1_i32 : i32 to index
    %c0_34 = arith.constant 0 : index
    %c0_35 = arith.constant 0 : index
    %57 = vector.load %arg10[%56, %c0_34, %c0_35] : memref<2x32x1xf32, #tpu.memory_space<vmem>>, vector<1x32x1xf32>
    %58 = vector.shape_cast %57 : vector<1x32x1xf32> to vector<32x1xf32>
    %59 = arith.maximumf %58, %55 : vector<32x1xf32>
    %60 = arith.index_cast %c1_i32 : i32 to index
    %c0_36 = arith.constant 0 : index
    %c0_37 = arith.constant 0 : index
    %61 = vector.load %arg10[%60, %c0_36, %c0_37] : memref<2x32x1xf32, #tpu.memory_space<vmem>>, vector<1x32x1xf32>
    %62 = vector.shape_cast %61 : vector<1x32x1xf32> to vector<32x1xf32>
    %63 = vector.shape_cast %59 : vector<32x1xf32> to vector<1x32x1xf32>
    tpu.vector_store %arg10[%60, %c0_36, %c0_37], %63 {strides = array<i32>} : memref<2x32x1xf32, #tpu.memory_space<vmem>>, vector<1x32x1xf32>,
    %c2_i32 = arith.constant 2 : i32
    %c0_i32_38 = arith.constant 0 : i32
    %64 = arith.cmpi eq, %arg1, %c0_i32_38 : i32
    %65 = arith.extui %64 : i1 to i32
    %c0_i32_39 = arith.constant 0 : i32
    %66 = arith.cmpi ne, %65, %c0_i32_39 : i32
    scf.if %66 {
      %c0_40 = arith.constant 0 : index
      %c0_41 = arith.constant 0 : index
      %c0_42 = arith.constant 0 : index
      %67 = vector.load %arg10[%c0_40, %c0_41, %c0_42] : memref<2x32x1xf32, #tpu.memory_space<vmem>>, vector<2x32x1xf32>
      %cst_43 = arith.constant dense<0xFF800000> : vector<2x32xf32>
      %68 = vector.multi_reduction <maximumf>, %67, %cst_43 [2] : vector<2x32x1xf32> to vector<2x32xf32>
      %69 = vector.shape_cast %68 : vector<2x32xf32> to vector<2x32x1xf32>
      %c0_44 = arith.constant 0 : index
      %c0_45 = arith.constant 0 : index
      %c0_46 = arith.constant 0 : index
      %70 = vector.load %arg9[%c0_44, %c0_45, %c0_46] : memref<2x32x1xf32, #tpu.memory_space<vmem>>, vector<2x32x1xf32>
      tpu.vector_store %arg9[%c0_44, %c0_45, %c0_46], %69 {strides = array<i32>} : memref<2x32x1xf32, #tpu.memory_space<vmem>>, vector<2x32x1xf32>,
    } else {
    }
    return
  }
  func.func @transform_0(%arg0: i32, %arg1: i32) -> (i32, i32, i32) {
    %c0_i32 = arith.constant 0 : i32
    %c0_i32_0 = arith.constant 0 : i32
    return %arg0, %c0_i32, %arg1 : i32, i32, i32
  }
  func.func @transform_1(%arg0: i32, %arg1: i32) -> (i32, i32, i32) {
    %c0_i32 = arith.constant 0 : i32
    %c0_i32_0 = arith.constant 0 : i32
    return %arg0, %c0_i32, %arg1 : i32, i32, i32
  }
  func.func @transform_2(%arg0: i32, %arg1: i32) -> (i32, i32) {
    %c0_i32 = arith.constant 0 : i32
    %c0_i32_0 = arith.constant 0 : i32
    %c0_i32_1 = arith.constant 0 : i32
    return %c0_i32, %c0_i32_0 : i32, i32
  }
  func.func @transform_3(%arg0: i32, %arg1: i32) -> (i32, i32) {
    %c0_i32 = arith.constant 0 : i32
    %c0_i32_0 = arith.constant 0 : i32
    %c0_i32_1 = arith.constant 0 : i32
    return %c0_i32, %c0_i32_0 : i32, i32
  }
  func.func @transform_4(%arg0: i32, %arg1: i32) -> (i32, i32) {
    %c0_i32 = arith.constant 0 : i32
    %c0_i32_0 = arith.constant 0 : i32
    %c0_i32_1 = arith.constant 0 : i32
    return %c0_i32, %c0_i32_0 : i32, i32
  }
  func.func @transform_5(%arg0: i32, %arg1: i32) -> (i32, i32) {
    %c0_i32 = arith.constant 0 : i32
    %c0_i32_0 = arith.constant 0 : i32
    %c0_i32_1 = arith.constant 0 : i32
    return %c0_i32, %c0_i32_0 : i32, i32
  }
  func.func @transform_6(%arg0: i32, %arg1: i32) -> (i32, i32) {
    %c0_i32 = arith.constant 0 : i32
    %c0_i32_0 = arith.constant 0 : i32
    %c0_i32_1 = arith.constant 0 : i32
    return %c0_i32, %c0_i32_0 : i32, i32
  }
  func.func @transform_7(%arg0: i32, %arg1: i32) -> (i32, i32, i32) {
    %c0_i32 = arith.constant 0 : i32
    %c0_i32_0 = arith.constant 0 : i32
    %c0_i32_1 = arith.constant 0 : i32
    return %arg0, %c0_i32, %c0_i32_0 : i32, i32, i32
  }
}

</mosaic_0001>

<bundles_post_ra>
// kernel: tpu_custom_call.1
= control target key start
LH: loop header
LB: loop body
LE: loop exit
PB: predicated region body
PF: predicated region fallthrough
CT: control target
= control target key end

     0   :  { %vm62_vm0 = vcmask 1043456   ;;  %vm55_vm1 = vcmask 31744   ;;  %vm148_vm2 = vcmask 1042432   ;;  %vm141_vm3 = vcmask 23552   ;;  %s967_s1 = inlined_call_operand.vmem [shape: f32[2,4,16], index: 1, kind: input, shape index: {}]   ;;  %s968_s3 = inlined_call_operand.vmem [shape: f32[16,4], index: 3, kind: input, shape index: {}]   ;;  %s969_s0 = inlined_call_operand.vmem [shape: f32[2,3,16], index: 0, kind: input, shape index: {}]   ;;  %s970_s2 = inlined_call_operand.vmem [shape: f32[16,3], index: 2, kind: input, shape index: {}]   ;;  %s971_s4 = inlined_call_operand.vmem [shape: f32[16,1], index: 4, kind: input, shape index: {}]   ;;  %s972_s6 = inlined_call_operand.vmem [shape: f32[32,1], index: 6, kind: input, shape index: {}]   ;;  %s973_s5 = inlined_call_operand.vmem [shape: f32[32,16], index: 5, kind: input, shape index: {}]   ;;  %s974_s7 = inlined_call_operand.vmem [shape: f32[2,32,1], index: 7, kind: output, shape index: {}]  }
   0x1   :  { %v54_v0 = vld [vmem:[%s967_s1] sm:$0xf]  ;;  %v42_v2 = vld [vmem:[%s968_s3 + $0x8] sm:$0xff]  ;;  %v700_v5 = vld [vmem:[%s967_s1 + $0x4] sm:$0xf]  ;;  %v791_v6 = vmov 0  }
   0x2   :  { %v41_v1 = vld [vmem:[%s968_s3] sm:$0xff]  ;;  %735 = vmatprep.subr.msk.mxu0 %vm62_vm0, %v54_v0  ;;  %789 = vset.pattern.permute.xlu0 %v791_v6  ;;  %v44_v8 = vld [vmem:[%s971_s4 + $0x8] sm:$0xff]  ;;  %v51_v11 = vld [vmem:[%s972_s6 + $0x10] sm:$0xff]  ;;  %vm261_vm4 = vcmask 130048   ;;  %vm30_vm5 = vcmask 7168   ;;  %v792_v35 = vmov 0.0  }
   0x3   :  { %737 = vmatprep.mubr.msk.f32.mxu0 %vm55_vm1, %v41_v1  ;;  %v53_v3 = vld [vmem:[%s969_s0] sm:$0x7]  ;;  %736 = vmatpush3.msk.msra.mxu0 %vm62_vm0, %v54_v0  ;;  %v40_v9 = vld [vmem:[%s970_s2 + $0x8] sm:$0xff]  ;;  %v699_v10 = vld [vmem:[%s969_s0 + $0x4] sm:$0x7]  ;;  %31 = vst.msk [vmem:[#allocation2] sm:$0xff] %vm30_vm5, %v792_v35 }
   0x4   :  { %v39_v4 = vld [vmem:[%s970_s2] sm:$0xff]  ;;  %738 = vmatmul.mubr.msk.f32.vlgmr.msra.gmra.mrb[0].mxu0 %vm55_vm1, %v42_v2  ;;  %740 = vmatprep.subr.msk.mxu0 %vm148_vm2, %v53_v3  ;;  %v50_v14 = vld [vmem:[%s972_s6 + $0x8] sm:$0xff]  ;;  %v52_v15 = vld [vmem:[%s972_s6 + $0x18] sm:$0xff]  ;;  %32 = vst.msk [vmem:[#allocation2 + $0x8] sm:$0xff] %vm30_vm5, %v792_v35 }
   0x5   :  { %v43_v7 = vld [vmem:[%s971_s4] sm:$0xff]  ;;  %741 = vmatpush3.msk.msra.mxu0 %vm148_vm2, %v53_v3  ;;  %742 = vmatprep.mubr.msk.f32.mxu0 %vm141_vm3, %v39_v4  ;;  %v46_v25 = vld [vmem:[%s973_s5 + $0x8] sm:$0xff]  ;;  %v47_v26 = vld [vmem:[%s973_s5 + $0x10] sm:$0xff]  ;;  %33 = vst.msk [vmem:[#allocation2 + $0x10] sm:$0xff] %vm30_vm5, %v792_v35 }
   0x6   :  { %755 = vmatprep.subr.msk.mxu0 %vm62_vm0, %v700_v5  ;;  %229 = vperm.xlu0 %789, %v43_v7   ;;  %v45_v12 = vld [vmem:[%s973_s5] sm:$0xff]  ;;  %v48_v30 = vld [vmem:[%s973_s5 + $0x18] sm:$0xff]  ;;  %34 = vst.msk [vmem:[#allocation2 + $0x18] sm:$0xff] %vm30_vm5, %v792_v35  ;;  %35 = vst.msk [vmem:[#allocation2 + $0x20] sm:$0xff] %vm30_vm5, %v792_v35 }
   0x7   :  { %790 = vset.pattern.permute.xlu1 %v791_v6  ;;  %749 = vmatprep.mubr.msk.f32.mxu1 %vm261_vm4, %v45_v12  ;;  %v49_v13 = vld [vmem:[%s972_s6] sm:$0xff]  ;;  %36 = vst.msk [vmem:[#allocation2 + $0x28] sm:$0xff] %vm30_vm5, %v792_v35  ;;  %37 = vst.msk [vmem:[#allocation2 + $0x30] sm:$0xff] %vm30_vm5, %v792_v35 }
   0x8   :  { %243 = vperm.xlu1 %790, %v49_v13   ;;  %38 = vst.msk [vmem:[#allocation2 + $0x38] sm:$0xff] %vm30_vm5, %v792_v35 }
   0xa   :  { %234 = vperm.xlu0 %789, %v44_v8  }
   0xb   :  { %v376_v8 = vld [vmem:[#allocation2 + $0x8] sm:$0xff] }
   0xc   :  { %743 = vmatmul.mubr.msk.f32.vlgmr.msra.gmra.mrb[0].mxu0 %vm141_vm3, %v40_v9  ;;  %248 = vperm.xlu1 %790, %v50_v14  }
   0xd   :  { %756 = vmatpush3.msk.msra.mxu0 %vm62_vm0, %v700_v5  ;;  %757 = vmatprep.mubr.msk.f32.mxu0 %vm55_vm1, %v41_v1  ;;  %v378_v14 = vld [vmem:[#allocation2 + $0x18] sm:$0xff] }
   0xe   :  { %760 = vmatprep.subr.msk.mxu0 %vm148_vm2, %v699_v10  ;;  %253 = vperm.xlu0 %789, %v51_v11  }
  0x10   :  { %758 = vmatmul.mubr.msk.f32.vlgmr.msra.gmra.mrb[2].mxu0 %vm55_vm1, %v42_v2  ;;  %258 = vperm.xlu1 %790, %v52_v15  }
  0x11   :  { %761 = vmatpush3.msk.msra.mxu0 %vm148_vm2, %v699_v10  ;;  %762 = vmatprep.mubr.msk.f32.mxu0 %vm141_vm3, %v39_v4 }
  0x18   :  { %763 = vmatmul.mubr.msk.f32.vlgmr.msra.gmra.mrb[2].mxu0 %vm141_vm3, %v40_v9  ;;  %v375_v9 = vld [vmem:[#allocation2] sm:$0xff] }
  0x85   :  { %v230_v16 = vpop.permute.xlu0 %229 }
  0x87   :  { %v244_v36 = vpop.permute.xlu1 %243 }
  0x89   :  { %v235_v17 = vpop.permute.xlu0 %234 }
  0x8b   :  { %v249_v37 = vpop.permute.xlu1 %248 }
  0x8d   :  { %v254_v46 = vpop.permute.xlu0 %253 }
  0x8f   :  { %v259_v44 = vpop.permute.xlu1 %258 }
  0xdf   :  { %v744_v18 = vpop.f32.mrb[0].mxu0 }
  0xe0   :  { %v238_v19 = vadd.f32 %v744_v18, %v235_v17  ;;  %v218_v20 = vpop.f32.mrb[1].mxu0 }
  0xe1   :  { %v237_v21 = vadd.f32 %v230_v16, %v218_v20 }
  0xe2   :  { %v240_v22 = vmax.f32 %v238_v19, 0.0 }
  0xe3   :  { %v239_v23 = vmax.f32 %v237_v21, 0.0 }
  0xe5   :  { %v775_v24 = vpack.c.bf16 %v240_v22, %v239_v23  ;;  %v654_v22 = vld [vmem:[#allocation2 + $0x20] sm:$0xff]  ;;  %v655_v23 = vld [vmem:[#allocation2 + $0x28] sm:$0xff] }
  0xe7   :  { %776 = vmatprep.subr.bf16.mxu1 %v775_v24 }
  0xe8   :  { %778 = vmatpush3.bf16.msra.mxu1 %v775_v24 }
  0xeb   :  { %750 = vmatmul.mubr.msk.f32.vlgmr.msra.gmra.mrb[0].mxu1 %vm261_vm4, %v46_v25  ;;  %v764_v27 = vpop.f32.mrb[2].mxu0 }
  0xec   :  { %v549_v28 = vadd.f32 %v764_v27, %v235_v17  ;;  %v539_v29 = vpop.f32.mrb[3].mxu0  ;;  %752 = vmatprep.mubr.msk.f32.mxu1 %vm261_vm4, %v47_v26  ;;  %v377_v17 = vld [vmem:[#allocation2 + $0x10] sm:$0xff] }
  0xed   :  { %v548_v31 = vadd.f32 %v539_v29, %v230_v16  ;;  %v656_v29 = vld [vmem:[#allocation2 + $0x30] sm:$0xff] }
  0xee   :  { %v551_v32 = vmax.f32 %v549_v28, 0.0 }
  0xef   :  { %v550_v33 = vmax.f32 %v548_v31, 0.0  ;;  %753 = vmatmul.mubr.msk.f32.gmra.mrb[2].mxu1 %vm261_vm4, %v48_v30 }
  0xf0   :  { %769 = vmatprep.mubr.msk.f32.mxu1 %vm261_vm4, %v45_v12 }
  0xf1   :  { %v779_v34 = vpack.c.bf16 %v551_v32, %v550_v33 }
  0xf3   :  { %780 = vmatprep.subr.bf16.mxu1 %v779_v34 }
  0xf4   :  { %782 = vmatpush3.bf16.msra.mxu1 %v779_v34 }
  0xf7   :  { %770 = vmatmul.mubr.msk.f32.vlgmr.msra.gmra.mrb[4].mxu1 %vm261_vm4, %v46_v25 }
  0xf8   :  { %772 = vmatprep.mubr.msk.f32.mxu1 %vm261_vm4, %v47_v26 }
  0xfb   :  { %773 = vmatmul.mubr.msk.f32.gmra.mrb[6].mxu1 %vm261_vm4, %v48_v30  ;;  %v657_v30 = vld [vmem:[#allocation2 + $0x38] sm:$0xff] }
 0x1be   :  { %v751_v38 = vpop.f32.mrb[0].mxu1 }
 0x1bf   :  { %v346_v39 = vadd.f32 %v751_v38, %v249_v37  ;;  %v340_v40 = vpop.f32.mrb[1].mxu1 }
 0x1c0   :  { %v341_v41 = vadd.f32 %v340_v40, %v244_v36 }
 0x1c1   :  { %v360_v42 = vmax.f32 %v346_v39, 0.0 }
 0x1c2   :  { %v359_v43 = vmax.f32 %v341_v41, 0.0  ;;  %v754_v45 = vpop.f32.mrb[2].mxu1 }
 0x1c3   :  { %v356_v47 = vadd.f32 %v754_v45, %v259_v44  ;;  %v350_v48 = vpop.f32.mrb[3].mxu1  ;;  %v366_v49 = vsel %vm261_vm4, %v360_v42, -inf }
 0x1c4   :  { %v351_v50 = vadd.f32 %v350_v48, %v254_v46  ;;  %v363_v51 = vsel %vm261_vm4, %v359_v43, -inf  ;;  %367 = vmax.xlane.f32.xlu1 %v366_v49 }
 0x1c5   :  { %v362_v52 = vmax.f32 %v356_v47, 0.0  ;;  %364 = vmax.xlane.f32.xlu0 %v363_v51 }
 0x1c6   :  { %v361_v54 = vmax.f32 %v351_v50, 0.0 }
 0x1c7   :  { %v372_v53 = vsel %vm261_vm4, %v362_v52, -inf }
 0x1c8   :  { %v369_v59 = vsel %vm261_vm4, %v361_v54, -inf }
 0x1c9   :  { %373 = vmax.xlane.f32.xlu0 %v372_v53 }
 0x1ca   :  { %v771_v55 = vpop.f32.mrb[4].mxu1 }
 0x1cb   :  { %v624_v56 = vadd.f32 %v771_v55, %v249_v37  ;;  %v618_v57 = vpop.f32.mrb[5].mxu1 }
 0x1cc   :  { %v619_v58 = vadd.f32 %v618_v57, %v244_v36 }
 0x1cd   :  { %v638_v60 = vmax.f32 %v624_v56, 0.0  ;;  %370 = vmax.xlane.f32.xlu0 %v369_v59 }
 0x1ce   :  { %v637_v61 = vmax.f32 %v619_v58, 0.0  ;;  %v774_v62 = vpop.f32.mrb[6].mxu1 }
 0x1cf   :  { %v634_v63 = vadd.f32 %v774_v62, %v259_v44  ;;  %v628_v0 = vpop.f32.mrb[7].mxu1  ;;  %v644_v1 = vsel %vm261_vm4, %v638_v60, -inf }
 0x1d0   :  { %v629_v2 = vadd.f32 %v628_v0, %v254_v46  ;;  %v641_v3 = vsel %vm261_vm4, %v637_v61, -inf }
 0x1d1   :  { %v640_v4 = vmax.f32 %v634_v63, 0.0  ;;  %642 = vmax.xlane.f32.xlu1 %v641_v3  ;;  %645 = vmax.xlane.f32.xlu0 %v644_v1 }
 0x1d2   :  { %v639_v5 = vmax.f32 %v629_v2, 0.0 }
 0x1d3   :  { %v650_v6 = vsel %vm261_vm4, %v640_v4, -inf }
 0x1d4   :  { %v647_v7 = vsel %vm261_vm4, %v639_v5, -inf }
 0x1d5   :  { %648 = vmax.xlane.f32.xlu1 %v647_v7  ;;  %651 = vmax.xlane.f32.xlu0 %v650_v6 }
 0x251   :  { %v368_v10 = vpop.xlane.xlu1 %367 }
 0x252   :  { %v365_v11 = vpop.xlane.xlu0 %364  ;;  %v380_v12 = vmax.f32 %v376_v8, %v368_v10 }
 0x253   :  { %v379_v13 = vmax.f32 %v375_v9, %v365_v11 }
 0x254   :  { %385 = vst.msk [vmem:[#allocation2 + $0x8] sm:$0xff] %vm30_vm5, %v380_v12 }
 0x255   :  { %384 = vst.msk [vmem:[#allocation2] sm:$0xff] %vm30_vm5, %v379_v13 }
 0x256   :  { %v374_v15 = vpop.xlane.xlu0 %373 }
 0x257   :  { %v382_v16 = vmax.f32 %v378_v14, %v374_v15 }
 0x259   :  { %387 = vst.msk [vmem:[#allocation2 + $0x18] sm:$0xff] %vm30_vm5, %v382_v16 }
 0x25a   :  { %v371_v18 = vpop.xlane.xlu0 %370 }
 0x25b   :  { %v670_v19 = vld [vmem:[#allocation2 + $0x8] sm:$0xff]  ;;  %v381_v20 = vmax.f32 %v377_v17, %v371_v18 }
 0x25c   :  { %v669_v21 = vld [vmem:[#allocation2] sm:$0xff]  ;;  %678 = vst.msk [vmem:[%s974_s7 + $0x8] sm:$0xff] %vm30_vm5, %v670_v19 }
 0x25d   :  { %677 = vst.msk [vmem:[%s974_s7] sm:$0xff] %vm30_vm5, %v669_v21  ;;  %386 = vst.msk [vmem:[#allocation2 + $0x10] sm:$0xff] %vm30_vm5, %v381_v20 }
 0x25e   :  { %v643_v24 = vpop.xlane.xlu1 %642  ;;  %v646_v25 = vpop.xlane.xlu0 %645 }
 0x25f   :  { %v658_v26 = vmax.f32 %v654_v22, %v643_v24  ;;  %v659_v27 = vmax.f32 %v655_v23, %v646_v25 }
 0x260   :  { %v672_v28 = vld [vmem:[#allocation2 + $0x18] sm:$0xff] }
 0x261   :  { %680 = vst.msk [vmem:[%s974_s7 + $0x18] sm:$0xff] %vm30_vm5, %v672_v28  ;;  %662 = vst.msk [vmem:[#allocation2 + $0x20] sm:$0xff] %vm30_vm5, %v658_v26 }
 0x262   :  { %663 = vst.msk [vmem:[#allocation2 + $0x28] sm:$0xff] %vm30_vm5, %v659_v27  ;;  %v649_v31 = vpop.xlane.xlu1 %648  ;;  %v652_v32 = vpop.xlane.xlu0 %651 }
 0x263   :  { %v660_v33 = vmax.f32 %v656_v29, %v649_v31  ;;  %v661_v34 = vmax.f32 %v657_v30, %v652_v32 }
 0x264   :  { %v671_v35 = vld [vmem:[#allocation2 + $0x10] sm:$0xff] }
 0x265   :  { %679 = vst.msk [vmem:[%s974_s7 + $0x10] sm:$0xff] %vm30_vm5, %v671_v35  ;;  %664 = vst.msk [vmem:[#allocation2 + $0x30] sm:$0xff] %vm30_vm5, %v660_v33 }
 0x266   :  { %665 = vst.msk [vmem:[#allocation2 + $0x38] sm:$0xff] %vm30_vm5, %v661_v34 }
 0x268   :  { %v673_v36 = vld [vmem:[#allocation2 + $0x20] sm:$0xff] }
 0x269   :  { %v674_v37 = vld [vmem:[#allocation2 + $0x28] sm:$0xff]  ;;  %681 = vst.msk [vmem:[%s974_s7 + $0x20] sm:$0xff] %vm30_vm5, %v673_v36 }
 0x26a   :  { %682 = vst.msk [vmem:[%s974_s7 + $0x28] sm:$0xff] %vm30_vm5, %v674_v37 }
 0x26c   :  { %v675_v38 = vld [vmem:[#allocation2 + $0x30] sm:$0xff] }
 0x26d   :  { %v676_v39 = vld [vmem:[#allocation2 + $0x38] sm:$0xff]  ;;  %683 = vst.msk [vmem:[%s974_s7 + $0x30] sm:$0xff] %vm30_vm5, %v675_v38 }
 0x26e   :  { %684 = vst.msk [vmem:[%s974_s7 + $0x38] sm:$0xff] %vm30_vm5, %v676_v39 }

</bundles_post_ra>
